<compile_context>
chip_gen: v5e
topology: v5e:2x2
jax: 0.10.0
libtpu: 0.0.40
codegen_flags: <defaults>
</compile_context>

<pallas_src>
import numpy as np
import jax
import jax.numpy as jnp
from jax import lax
from jax.experimental import pallas as pl
from jax.experimental.pallas import tpu as pltpu

LN_EPS = 1e-5     # torch.nn.LayerNorm default
BN_EPS = 1e-5     # torch.nn.BatchNorm1d default
LANE = 128
SUB = 8
NEG = -1e30       # softmax mask value for padded columns


def _rup(x, m):
    return ((x + m - 1) // m) * m


def _ln(x, g, b, col_mask, inv_d):
    """LayerNorm over the true feature width (padded cols are zero / gamma=0)."""
    mean = jnp.sum(x * col_mask, axis=-1, keepdims=True) * inv_d
    diff = (x - mean) * col_mask
    var = jnp.sum(diff * diff, axis=-1, keepdims=True) * inv_d
    return diff * lax.rsqrt(var + LN_EPS) * g + b


# ---------------------------------------------------------------------------
# Kernel 1: LINKX trunk (A@Wa, X@Wx, combine through split W) with K-reduction
# ---------------------------------------------------------------------------
def _trunk_kernel():
    def kernel(a_ref, x_ref, wa_ref, ba_ref, wx_ref, bx_ref,
               wWA_ref, wWX_ref, bW_ref, xa_out, xx_out, x_out, acc_ref):
        k = pl.program_id(1)

        @pl.when(k == 0)
        def _():
            acc_ref[...] = jnp.zeros_like(acc_ref)

        a = a_ref[...].astype(jnp.float32)          # bf16 A tile -> f32 on chip
        acc_ref[...] += jnp.dot(a, wa_ref[...], preferred_element_type=jnp.float32)

        @pl.when(k == pl.num_programs(1) - 1)
        def _():
            xa = acc_ref[...] + ba_ref[...]
            xx = jnp.dot(x_ref[...], wx_ref[...],
                         preferred_element_type=jnp.float32) + bx_ref[...]
            xw = (jnp.dot(xa, wWA_ref[...], preferred_element_type=jnp.float32)
                  + jnp.dot(xx, wWX_ref[...], preferred_element_type=jnp.float32)
                  + bW_ref[...])
            xa_out[...] = xa
            xx_out[...] = xx
            x_out[...] = xw
    return kernel


def linkx_trunk(A_bf16, X, wa, ba, wx, bx, wWA, wWX, bW, tm, tk):
    Np, Kp = A_bf16.shape
    dp = wa.shape[1]
    inp = X.shape[1]
    out_sd = jax.ShapeDtypeStruct((Np, dp), jnp.float32)
    return pl.pallas_call(
        _trunk_kernel(),
        grid=(Np // tm, Kp // tk),
        in_specs=[
            pl.BlockSpec((tm, tk), lambda i, k: (i, k)),      # A tile
            pl.BlockSpec((tm, inp), lambda i, k: (i, 0)),     # X tile
            pl.BlockSpec((tk, dp), lambda i, k: (k, 0)),      # Wa tile
            pl.BlockSpec((1, dp), lambda i, k: (0, 0)),       # ba
            pl.BlockSpec((inp, dp), lambda i, k: (0, 0)),     # Wx
            pl.BlockSpec((1, dp), lambda i, k: (0, 0)),       # bx
            pl.BlockSpec((dp, dp), lambda i, k: (0, 0)),      # W (A half)
            pl.BlockSpec((dp, dp), lambda i, k: (0, 0)),      # W (X half)
            pl.BlockSpec((1, dp), lambda i, k: (0, 0)),       # bW
        ],
        out_specs=[pl.BlockSpec((tm, dp), lambda i, k: (i, 0))] * 3,
        out_shape=(out_sd, out_sd, out_sd),
        scratch_shapes=[pltpu.VMEM((tm, dp), jnp.float32)],
        compiler_params=pltpu.CompilerParams(
            dimension_semantics=("parallel", "arbitrary")),
    )(A_bf16, X, wa, ba, wx, bx, wWA, wWX, bW)


# ---------------------------------------------------------------------------
# Kernel 2: ProtoAttention (slot attention + GRU + LN + MLP), batched over classes
# ---------------------------------------------------------------------------
def _proto_attn_kernel(d_true, scale, eps, n_iter, d_pad):
    def kernel(x_ref, msk_ref, p_ref, wq_ref, bq_ref, wk_ref, bk_ref,
               wv_ref, bv_ref, wih_ref, whh_ref, bih_ref, bhh_ref,
               lg_ref, lb_ref, m0w_ref, m0b_ref, m1w_ref, m1b_ref, o_ref):
        inv_d = 1.0 / d_true
        dmask = (lax.broadcasted_iota(jnp.int32, (1, d_pad), 1)
                 < d_true).astype(jnp.float32)

        xc = x_ref[...]                               # (n_pad, d_pad), padded rows masked
        node_mask = msk_ref[...]                      # (1, n_pad)
        k = jnp.dot(xc, wk_ref[...], preferred_element_type=jnp.float32) + bk_ref[...]
        v = jnp.dot(xc, wv_ref[...], preferred_element_type=jnp.float32) + bv_ref[...]

        wq, bq = wq_ref[...], bq_ref[...]
        wih, whh = wih_ref[...], whh_ref[...]
        bih, bhh = bih_ref[...], bhh_ref[...]
        lg, lb = lg_ref[...], lb_ref[...]
        m0w, m0b = m0w_ref[...], m0b_ref[...]
        m1w, m1b = m1w_ref[...], m1b_ref[...]
        proto = p_ref[...]                            # (P, d_pad)
        dp = d_pad

        for _ in range(n_iter):
            q = jnp.dot(proto, wq, preferred_element_type=jnp.float32) + bq
            dots = lax.dot_general(q, k, (((1,), (1,)), ((), ())),
                                   preferred_element_type=jnp.float32) * scale  # (P,n)
            m = jnp.max(dots, axis=0, keepdims=True)
            e = jnp.exp(dots - m)
            attn = e * pl.reciprocal(jnp.sum(e, axis=0, keepdims=True), approx=True)
            attn = (attn + eps) * node_mask           # drop padded node columns
            denom = jnp.maximum(jnp.sum(attn, axis=-1, keepdims=True), 1e-30)
            attn = attn * pl.reciprocal(denom, approx=True)
            updates = jnp.dot(attn, v, preferred_element_type=jnp.float32)       # (P,d)

            # GRUCell (r,z,n gate order; each gate slab lane-aligned at d_pad)
            gi = jnp.dot(updates, wih, preferred_element_type=jnp.float32) + bih
            gh = jnp.dot(proto, whh, preferred_element_type=jnp.float32) + bhh
            r = jax.nn.sigmoid(gi[:, :dp] + gh[:, :dp])
            z = jax.nn.sigmoid(gi[:, dp:2 * dp] + gh[:, dp:2 * dp])
            n = jnp.tanh(gi[:, 2 * dp:] + r * gh[:, 2 * dp:])
            proto = (1.0 - z) * n + z * proto

            proto = _ln(proto, lg, lb, dmask, inv_d)
            h1 = jnp.maximum(
                jnp.dot(proto, m0w, preferred_element_type=jnp.float32) + m0b, 0.0)
            proto = proto + jnp.dot(h1, m1w, preferred_element_type=jnp.float32) + m1b

        o_ref[...] = proto
    return kernel


def proto_attention(x_by_class, node_mask, proto_init, params, cfg, dims):
    C, P = cfg['num_classes'], cfg['num_proto']
    d_pad, h_pad = dims['d_pad'], dims['h_pad']
    n_pad = x_by_class.shape[1]
    kern = _proto_attn_kernel(cfg['hidden'], cfg['hidden'] ** (-0.5), cfg['eps'],
                              cfg['n_iter'], d_pad)
    full = lambda shape: pl.BlockSpec(shape, lambda c: (0, 0))
    return pl.pallas_call(
        kern,
        grid=(C,),
        in_specs=[
            pl.BlockSpec((None, n_pad, d_pad), lambda c: (c, 0, 0)),
            pl.BlockSpec((None, 1, n_pad), lambda c: (c, 0, 0)),
            pl.BlockSpec((None, P, d_pad), lambda c: (c, 0, 0)),
            full((d_pad, d_pad)), full((1, d_pad)),          # to_q
            full((d_pad, d_pad)), full((1, d_pad)),          # to_k
            full((d_pad, d_pad)), full((1, d_pad)),          # to_v
            full((d_pad, 3 * d_pad)), full((d_pad, 3 * d_pad)),
            full((1, 3 * d_pad)), full((1, 3 * d_pad)),      # GRU
            full((1, d_pad)), full((1, d_pad)),              # norm_pre_ff
            full((d_pad, h_pad)), full((1, h_pad)),          # mlp layer 0
            full((h_pad, d_pad)), full((1, d_pad)),          # mlp layer 1
        ],
        out_specs=pl.BlockSpec((None, P, d_pad), lambda c: (c, 0, 0)),
        out_shape=jax.ShapeDtypeStruct((C, P, d_pad), jnp.float32),
        compiler_params=pltpu.CompilerParams(dimension_semantics=("parallel",)),
    )(x_by_class, node_mask, proto_init,
      params['to_q_w'], params['to_q_b'], params['to_k_w'], params['to_k_b'],
      params['to_v_w'], params['to_v_b'],
      params['gru_wih'], params['gru_whh'], params['gru_bih'], params['gru_bhh'],
      params['norm_pre_ff_g'], params['norm_pre_ff_b'],
      params['pa_mlp0_w'], params['pa_mlp0_b'],
      params['pa_mlp1_w'], params['pa_mlp1_b'])


# ---------------------------------------------------------------------------
# Kernel 3: ProtoGNN norm + proto_conv (masked non-train add) + residual/relu
#           + mlp_final (eval) + log_softmax, fused per row-tile
# ---------------------------------------------------------------------------
def _tail_kernel(d_true, c_true, cp_true, scale, eps, conv_iter, d_pad, cp_pad, c_pad):
    def kernel(x_ref, xa_ref, xx_ref, nt_ref, proto_ref,
               gg_ref, gb_ref, ig_ref, ib_ref,
               w0_ref, b0_ref, bns_ref, bnt_ref, w1_ref, b1_ref, o_ref):
        inv_d = 1.0 / d_true
        dmask = (lax.broadcasted_iota(jnp.int32, (1, d_pad), 1)
                 < d_true).astype(jnp.float32)
        pmask = jnp.where(lax.broadcasted_iota(jnp.int32, (1, cp_pad), 1) < cp_true,
                          0.0, NEG)
        cmask = jnp.where(lax.broadcasted_iota(jnp.int32, (1, c_pad), 1) < c_true,
                          0.0, NEG)

        protos = proto_ref[...]                                  # (cp_pad, d_pad)
        x = _ln(x_ref[...], gg_ref[...], gb_ref[...], dmask, inv_d)   # ProtoGNN.norm
        ig, ib = ig_ref[...], ib_ref[...]

        # proto_conv is row-wise: compute for all rows, apply only to non-train rows.
        xc = x
        for _ in range(conv_iter):
            xn = _ln(xc, ig, ib, dmask, inv_d)
            dots = lax.dot_general(xn, protos, (((1,), (1,)), ((), ())),
                                   preferred_element_type=jnp.float32) * scale + pmask
            mx = jnp.max(dots, axis=-1, keepdims=True)
            e = jnp.exp(dots - mx)
            attn = e * pl.reciprocal(jnp.sum(e, axis=-1, keepdims=True),
                                     approx=True) + eps
            xc = jnp.dot(attn, protos, preferred_element_type=jnp.float32)
        x = x + nt_ref[...] * xc                                  # aggr='add' on ~train

        h = jnp.maximum(x + xa_ref[...] + xx_ref[...], 0.0)       # relu(x + xA + xX)
        t = jnp.maximum(jnp.dot(h, w0_ref[...],
                                preferred_element_type=jnp.float32) + b0_ref[...], 0.0)
        t = t * bns_ref[...] + bnt_ref[...]                       # BatchNorm1d (eval)
        logits = jnp.dot(t, w1_ref[...],
                         preferred_element_type=jnp.float32) + b1_ref[...]
        logits = logits + cmask                                   # mask padded classes
        mx = jnp.max(logits, axis=-1, keepdims=True)
        s = logits - mx
        o_ref[...] = s - jnp.log(jnp.sum(jnp.exp(s), axis=-1, keepdims=True))
    return kernel


def proto_tail(x, xa, xx, nt_mask, protos, params, cfg, dims, tm):
    Np, d_pad = x.shape
    cp_pad = protos.shape[0]
    c_pad = dims['c_pad']
    kern = _tail_kernel(cfg['hidden'], cfg['num_classes'],
                        cfg['num_classes'] * cfg['num_proto'],
                        cfg['hidden'] ** (-0.5), cfg['eps'], cfg['conv_iter'],
                        d_pad, cp_pad, c_pad)
    full = lambda shape: pl.BlockSpec(shape, lambda i: (0, 0))
    row = lambda w: pl.BlockSpec((tm, w), lambda i: (i, 0))
    return pl.pallas_call(
        kern,
        grid=(Np // tm,),
        in_specs=[row(d_pad), row(d_pad), row(d_pad), row(1),
                  full((cp_pad, d_pad)),
                  full((1, d_pad)), full((1, d_pad)),     # gnn norm
                  full((1, d_pad)), full((1, d_pad)),     # norm_input
                  full((d_pad, d_pad)), full((1, d_pad)),  # mf0
                  full((1, d_pad)), full((1, d_pad)),     # bn scale/shift
                  full((d_pad, c_pad)), full((1, c_pad))],  # mf1
        out_specs=pl.BlockSpec((tm, c_pad), lambda i: (i, 0)),
        out_shape=jax.ShapeDtypeStruct((Np, c_pad), jnp.float32),
        compiler_params=pltpu.CompilerParams(dimension_semantics=("parallel",)),
    )(x, xa, xx, nt_mask, protos,
      params['gnn_norm_g'], params['gnn_norm_b'],
      params['norm_input_g'], params['norm_input_b'],
      params['mf0_w'], params['mf0_b'],
      params['mf_bn_scale'], params['mf_bn_shift'],
      params['mf1_w'], params['mf1_b'])


# ---------------------------------------------------------------------------
# Padded-shape bookkeeping, parameters, host-side glue
# ---------------------------------------------------------------------------
def compute_dims(cfg):
    N = cfg['num_nodes']
    d_pad = _rup(cfg['hidden'], LANE)
    in_pad = _rup(cfg['in_channels'], LANE)
    c_pad = _rup(cfg['num_classes'], LANE)
    h_pad = _rup(max(cfg['hidden'], cfg['proto_hidden']), LANE)
    tm = 256 if N >= 256 else _rup(N, SUB)
    n_pad_rows = _rup(N, tm)
    # A-column tile: (256 x 512) bf16 x2 buffers is ~0.5 MiB -> safe on v7x 64 MiB VMEM.
    tk = 512 if N >= 512 else _rup(N, LANE)
    k_pad = _rup(N, tk)
    return dict(d_pad=d_pad, in_pad=in_pad, c_pad=c_pad, h_pad=h_pad,
                tm=tm, n_pad_rows=n_pad_rows, tk=tk, k_pad=k_pad)


def init_params(key, cfg, dims):
    d = cfg['hidden']
    dp = dims['d_pad']
    in_ch, inp = cfg['in_channels'], dims['in_pad']
    C, cpad = cfg['num_classes'], dims['c_pad']
    P = cfg['num_proto']
    mlp_h, hp = max(d, cfg['proto_hidden']), dims['h_pad']
    kp = dims['k_pad']
    ks = jax.random.split(key, 16)

    def w(k, r, c, rp, cp, s=0.1):
        base = jax.random.normal(k, (r, c), jnp.float32) * s
        return jnp.zeros((rp, cp), jnp.float32).at[:r, :c].set(base)

    def gvec(cp, c):                    # gamma = 1 on real cols, 0 on padding
        return jnp.zeros((1, cp), jnp.float32).at[:, :c].set(1.0)

    z = lambda cp: jnp.zeros((1, cp), jnp.float32)

    def gru_w(k):                       # gate slabs (r,z,n), each lane-aligned at dp
        parts = jax.random.normal(k, (3, d, d), jnp.float32) * 0.1
        full = jnp.zeros((dp, 3 * dp), jnp.float32)
        for g in range(3):
            full = full.at[:d, g * dp:g * dp + d].set(parts[g])
        return full

    proto = jnp.zeros((C, P, dp), jnp.float32).at[:, :, :d].set(
        jax.random.normal(ks[7], (C, P, d), jnp.float32))

    return {
        # LINKX trunk (W split into its xA / xX halves; concat eliminated)
        'mlpA_w': w(ks[0], cfg['num_nodes'], d, kp, dp), 'mlpA_b': z(dp),
        'mlpX_w': w(ks[1], in_ch, d, inp, dp),           'mlpX_b': z(dp),
        'W_wA': w(ks[2], d, d, dp, dp), 'W_wX': w(ks[3], d, d, dp, dp), 'W_b': z(dp),
        # mlp_final (2 layers; BatchNorm1d eval folded to scale/shift)
        'mf0_w': w(ks[4], d, d, dp, dp), 'mf0_b': z(dp),
        'mf_bn_scale': gvec(dp, d) / np.sqrt(1.0 + BN_EPS), 'mf_bn_shift': z(dp),
        'mf1_w': w(ks[5], d, C, dp, cpad), 'mf1_b': z(cpad),
        # ProtoGNN
        'gnn_norm_g': gvec(dp, d), 'gnn_norm_b': z(dp),
        # ProtoAttention
        'proto': proto,
        'to_q_w': w(ks[8], d, d, dp, dp),  'to_q_b': z(dp),
        'to_k_w': w(ks[9], d, d, dp, dp),  'to_k_b': z(dp),
        'to_v_w': w(ks[10], d, d, dp, dp), 'to_v_b': z(dp),
        'gru_wih': gru_w(ks[11]), 'gru_whh': gru_w(ks[12]),
        'gru_bih': z(3 * dp),     'gru_bhh': z(3 * dp),
        'pa_mlp0_w': w(ks[13], d, mlp_h, dp, hp), 'pa_mlp0_b': z(hp),
        'pa_mlp1_w': w(ks[14], mlp_h, d, hp, dp), 'pa_mlp1_b': z(dp),
        'norm_input_g': gvec(dp, d),  'norm_input_b': z(dp),
        'norm_pre_ff_g': gvec(dp, d), 'norm_pre_ff_b': z(dp),
    }


def build_dense_adj(edge_index_np, n_rows_pad, k_pad):
    row = edge_index_np[0] - edge_index_np[0].min()
    col = edge_index_np[1]
    A = np.zeros((n_rows_pad, k_pad), np.float32)
    A[row, col] = 1.0
    return jnp.asarray(A, dtype=jnp.bfloat16)   # 0/1 exact in bf16; halves HBM bytes


def linkx_proto_forward(params, A_pad, X_pad, y_np, idx_train_np, cfg, dims):
    N, C = cfg['num_nodes'], cfg['num_classes']
    d_pad = dims['d_pad']
    tm, tk = dims['tm'], dims['tk']

    # K1: trunk
    xA, xX, x = linkx_trunk(A_pad, X_pad,
                            params['mlpA_w'], params['mlpA_b'],
                            params['mlpX_w'], params['mlpX_b'],
                            params['W_wA'], params['W_wX'], params['W_b'],
                            tm, tk)

    # group train nodes by class (static, host-side), pad to a fixed lane-dense length
    train_idx = np.nonzero(idx_train_np)[0]
    groups = [train_idx[y_np[train_idx] == c] for c in range(C)]
    max_n = max((len(g) for g in groups), default=0)
    n_pad = max(LANE, _rup(max(max_n, 1), LANE))
    gather_idx = np.zeros((C, n_pad), np.int32)
    node_mask = np.zeros((C, 1, n_pad), np.float32)
    for c, g in enumerate(groups):
        gather_idx[c, :len(g)] = g
        node_mask[c, 0, :len(g)] = 1.0
    x_by_class = jnp.take(xX, jnp.asarray(gather_idx.reshape(-1)), axis=0)
    x_by_class = x_by_class.reshape(C, n_pad, d_pad)

    # K2: prototypes per class (masked padded nodes inside the kernel)
    prototypes = proto_attention(x_by_class, jnp.asarray(node_mask),
                                 params['proto'], params, cfg, dims)   # (C,P,d_pad)

    cp = C * cfg['num_proto']
    cp_pad = _rup(cp, SUB)
    protos_flat = jnp.zeros((cp_pad, d_pad), jnp.float32).at[:cp].set(
        prototypes.reshape(cp, d_pad))

    # K3: norm + proto_conv (applied to non-train rows via mask) + tail MLP + log_softmax
    Np = X_pad.shape[0]
    nt = np.zeros((Np, 1), np.float32)
    nt[:N, 0] = (~idx_train_np).astype(np.float32)
    out_pad = proto_tail(x, xA, xX, jnp.asarray(nt), protos_flat,
                         params, cfg, dims, tm)
    return out_pad[:N, :C]


# ---------------------------------------------------------------------------
if __name__ == "__main__":
    cfg = dict(num_nodes=24, in_channels=16, hidden=32, num_classes=3,
               num_proto=2, n_iter=2, conv_iter=1, eps=1e-8, proto_hidden=32)
    dims = compute_dims(cfg)

    key = jax.random.PRNGKey(0)
    k_feat, k_par = jax.random.split(key)
    m = cfg['num_nodes']

    x_feat = jax.random.normal(k_feat, (m, cfg['in_channels']), jnp.float32)
    y_np = (np.arange(m) % cfg['num_classes']).astype(np.int64)        # labels
    idx_train_np = np.zeros(m, dtype=bool)
    idx_train_np[:12] = True                                           # 4 train / class

    # deterministic ring graph, both directions
    src = np.arange(m)
    dst = (np.arange(m) + 1) % m
    edge_index = np.stack([np.concatenate([src, dst]), np.concatenate([dst, src])])
    A_pad = build_dense_adj(edge_index, dims['n_pad_rows'], dims['k_pad'])

    X_pad_np = np.zeros((dims['n_pad_rows'], dims['in_pad']), np.float32)
    X_pad_np[:m, :cfg['in_channels']] = np.asarray(x_feat)
    X_pad = jnp.asarray(X_pad_np)

    params = init_params(k_par, cfg, dims)
    out = linkx_proto_forward(params, A_pad, X_pad, y_np, idx_train_np, cfg, dims)
    out = jax.block_until_ready(out)

    assert out.shape == (m, cfg['num_classes'])
    assert bool(jnp.all(jnp.isfinite(out)))
    # rows of log_softmax should sum (in prob space) to 1
    assert bool(jnp.allclose(jnp.sum(jnp.exp(out), axis=-1), 1.0, atol=1e-4))
    print("KERNEL_OK")
</pallas_src>

<mosaic_0001>
module attributes {stable_mosaic.version = 11 : i64} {
  func.func @kernel(%arg0: i32, %arg1: i32, %arg2: memref<24x128xbf16, #tpu.memory_space<vmem>>, %arg3: memref<24x128xf32, #tpu.memory_space<vmem>>, %arg4: memref<128x128xf32, #tpu.memory_space<vmem>>, %arg5: memref<1x128xf32, #tpu.memory_space<vmem>>, %arg6: memref<128x128xf32, #tpu.memory_space<vmem>>, %arg7: memref<1x128xf32, #tpu.memory_space<vmem>>, %arg8: memref<128x128xf32, #tpu.memory_space<vmem>>, %arg9: memref<128x128xf32, #tpu.memory_space<vmem>>, %arg10: memref<1x128xf32, #tpu.memory_space<vmem>>, %arg11: memref<24x128xf32, #tpu.memory_space<vmem>>, %arg12: memref<24x128xf32, #tpu.memory_space<vmem>>, %arg13: memref<24x128xf32, #tpu.memory_space<vmem>>, %arg14: memref<24x128xf32, #tpu.memory_space<vmem>>) attributes {dimension_semantics = [#tpu.dimension_semantics<parallel>, #tpu.dimension_semantics<arbitrary>], iteration_bounds = array<i64: 1, 1>, scalar_prefetch = 0 : i64, scratch_operands = 1 : i64, tpu.core_type = #tpu.core_type<tc>, window_params = [{transform_indices = @transform_0, window_bounds = array<i64: 24, 128>}, {transform_indices = @transform_1, window_bounds = array<i64: 24, 128>}, {transform_indices = @transform_2, window_bounds = array<i64: 128, 128>}, {pipeline_mode = #tpu.pipeline_mode<synchronous>, transform_indices = @transform_3, window_bounds = array<i64: 1, 128>}, {pipeline_mode = #tpu.pipeline_mode<synchronous>, transform_indices = @transform_4, window_bounds = array<i64: 128, 128>}, {pipeline_mode = #tpu.pipeline_mode<synchronous>, transform_indices = @transform_5, window_bounds = array<i64: 1, 128>}, {pipeline_mode = #tpu.pipeline_mode<synchronous>, transform_indices = @transform_6, window_bounds = array<i64: 128, 128>}, {pipeline_mode = #tpu.pipeline_mode<synchronous>, transform_indices = @transform_7, window_bounds = array<i64: 128, 128>}, {pipeline_mode = #tpu.pipeline_mode<synchronous>, transform_indices = @transform_8, window_bounds = array<i64: 1, 128>}, {transform_indices = @transform_9, window_bounds = array<i64: 24, 128>}, {transform_indices = @transform_10, window_bounds = array<i64: 24, 128>}, {transform_indices = @transform_11, window_bounds = array<i64: 24, 128>}]} {
    %c0_i32 = arith.constant 0 : i32
    %0 = arith.cmpi eq, %arg1, %c0_i32 : i32
    %1 = arith.extui %0 : i1 to i32
    %c0_i32_0 = arith.constant 0 : i32
    %2 = arith.cmpi ne, %1, %c0_i32_0 : i32
    scf.if %2 {
      %cst_10 = arith.constant 0.000000e+00 : f32
      %13 = vector.broadcast %cst_10 : f32 to vector<24x128xf32>
      %c0_11 = arith.constant 0 : index
      %c0_12 = arith.constant 0 : index
      %14 = vector.load %arg14[%c0_11, %c0_12] : memref<24x128xf32, #tpu.memory_space<vmem>>, vector<24x128xf32>
      tpu.vector_store %arg14[%c0_11, %c0_12], %13 {strides = array<i32>} : memref<24x128xf32, #tpu.memory_space<vmem>>, vector<24x128xf32>,
    } else {
    }
    %c0 = arith.constant 0 : index
    %c0_1 = arith.constant 0 : index
    %3 = vector.load %arg2[%c0, %c0_1] : memref<24x128xbf16, #tpu.memory_space<vmem>>, vector<24x128xbf16>
    %4 = arith.extf %3 : vector<24x128xbf16> to vector<24x128xf32>
    %c0_2 = arith.constant 0 : index
    %c0_3 = arith.constant 0 : index
    %5 = vector.load %arg14[%c0_2, %c0_3] : memref<24x128xf32, #tpu.memory_space<vmem>>, vector<24x128xf32>
    %c0_4 = arith.constant 0 : index
    %c0_5 = arith.constant 0 : index
    %6 = vector.load %arg4[%c0_4, %c0_5] : memref<128x128xf32, #tpu.memory_space<vmem>>, vector<128x128xf32>
    %cst = arith.constant dense<0.000000e+00> : vector<24x128xf32>
    %7 = tpu.matmul %4, %6, %cst {dimension_numbers = #tpu.dot_dimension_numbers<[1], [0], [0], [1], [0, 0, 1, 1], [], []>} : vector<24x128xf32>, vector<128x128xf32>, vector<24x128xf32> -> vector<24x128xf32>
    %8 = arith.addf %5, %7 : vector<24x128xf32>
    %c0_6 = arith.constant 0 : index
    %c0_7 = arith.constant 0 : index
    %9 = vector.load %arg14[%c0_6, %c0_7] : memref<24x128xf32, #tpu.memory_space<vmem>>, vector<24x128xf32>
    tpu.vector_store %arg14[%c0_6, %c0_7], %8 {strides = array<i32>} : memref<24x128xf32, #tpu.memory_space<vmem>>, vector<24x128xf32>,
    %c0_i32_8 = arith.constant 0 : i32
    %10 = arith.cmpi eq, %arg1, %c0_i32_8 : i32
    %11 = arith.extui %10 : i1 to i32
    %c0_i32_9 = arith.constant 0 : i32
    %12 = arith.cmpi ne, %11, %c0_i32_9 : i32
    scf.if %12 {
      %c0_10 = arith.constant 0 : index
      %c0_11 = arith.constant 0 : index
      %13 = vector.load %arg14[%c0_10, %c0_11] : memref<24x128xf32, #tpu.memory_space<vmem>>, vector<24x128xf32>
      %c0_12 = arith.constant 0 : index
      %c0_13 = arith.constant 0 : index
      %14 = vector.load %arg5[%c0_12, %c0_13] : memref<1x128xf32, #tpu.memory_space<vmem>>, vector<1x128xf32>
      %15 = vector.broadcast %14 : vector<1x128xf32> to vector<24x128xf32>
      %16 = arith.addf %13, %15 : vector<24x128xf32>
      %c0_14 = arith.constant 0 : index
      %c0_15 = arith.constant 0 : index
      %17 = vector.load %arg3[%c0_14, %c0_15] : memref<24x128xf32, #tpu.memory_space<vmem>>, vector<24x128xf32>
      %c0_16 = arith.constant 0 : index
      %c0_17 = arith.constant 0 : index
      %18 = vector.load %arg6[%c0_16, %c0_17] : memref<128x128xf32, #tpu.memory_space<vmem>>, vector<128x128xf32>
      %cst_18 = arith.constant dense<0.000000e+00> : vector<24x128xf32>
      %19 = tpu.matmul %17, %18, %cst_18 {dimension_numbers = #tpu.dot_dimension_numbers<[1], [0], [0], [1], [0, 0, 1, 1], [], []>} : vector<24x128xf32>, vector<128x128xf32>, vector<24x128xf32> -> vector<24x128xf32>
      %c0_19 = arith.constant 0 : index
      %c0_20 = arith.constant 0 : index
      %20 = vector.load %arg7[%c0_19, %c0_20] : memref<1x128xf32, #tpu.memory_space<vmem>>, vector<1x128xf32>
      %21 = vector.broadcast %20 : vector<1x128xf32> to vector<24x128xf32>
      %22 = arith.addf %19, %21 : vector<24x128xf32>
      %c0_21 = arith.constant 0 : index
      %c0_22 = arith.constant 0 : index
      %23 = vector.load %arg8[%c0_21, %c0_22] : memref<128x128xf32, #tpu.memory_space<vmem>>, vector<128x128xf32>
      %cst_23 = arith.constant dense<0.000000e+00> : vector<24x128xf32>
      %24 = tpu.matmul %16, %23, %cst_23 {dimension_numbers = #tpu.dot_dimension_numbers<[1], [0], [0], [1], [0, 0, 1, 1], [], []>} : vector<24x128xf32>, vector<128x128xf32>, vector<24x128xf32> -> vector<24x128xf32>
      %c0_24 = arith.constant 0 : index
      %c0_25 = arith.constant 0 : index
      %25 = vector.load %arg9[%c0_24, %c0_25] : memref<128x128xf32, #tpu.memory_space<vmem>>, vector<128x128xf32>
      %cst_26 = arith.constant dense<0.000000e+00> : vector<24x128xf32>
      %26 = tpu.matmul %22, %25, %cst_26 {dimension_numbers = #tpu.dot_dimension_numbers<[1], [0], [0], [1], [0, 0, 1, 1], [], []>} : vector<24x128xf32>, vector<128x128xf32>, vector<24x128xf32> -> vector<24x128xf32>
      %27 = arith.addf %24, %26 : vector<24x128xf32>
      %c0_27 = arith.constant 0 : index
      %c0_28 = arith.constant 0 : index
      %28 = vector.load %arg10[%c0_27, %c0_28] : memref<1x128xf32, #tpu.memory_space<vmem>>, vector<1x128xf32>
      %29 = vector.broadcast %28 : vector<1x128xf32> to vector<24x128xf32>
      %30 = arith.addf %27, %29 : vector<24x128xf32>
      %c0_29 = arith.constant 0 : index
      %c0_30 = arith.constant 0 : index
      %31 = vector.load %arg11[%c0_29, %c0_30] : memref<24x128xf32, #tpu.memory_space<vmem>>, vector<24x128xf32>
      tpu.vector_store %arg11[%c0_29, %c0_30], %16 {strides = array<i32>} : memref<24x128xf32, #tpu.memory_space<vmem>>, vector<24x128xf32>,
      %c0_31 = arith.constant 0 : index
      %c0_32 = arith.constant 0 : index
      %32 = vector.load %arg12[%c0_31, %c0_32] : memref<24x128xf32, #tpu.memory_space<vmem>>, vector<24x128xf32>
      tpu.vector_store %arg12[%c0_31, %c0_32], %22 {strides = array<i32>} : memref<24x128xf32, #tpu.memory_space<vmem>>, vector<24x128xf32>,
      %c0_33 = arith.constant 0 : index
      %c0_34 = arith.constant 0 : index
      %33 = vector.load %arg13[%c0_33, %c0_34] : memref<24x128xf32, #tpu.memory_space<vmem>>, vector<24x128xf32>
      tpu.vector_store %arg13[%c0_33, %c0_34], %30 {strides = array<i32>} : memref<24x128xf32, #tpu.memory_space<vmem>>, vector<24x128xf32>,
    } else {
    }
    return
  }
  func.func @transform_0(%arg0: i32, %arg1: i32) -> (i32, i32) {
    %c0_i32 = arith.constant 0 : i32
    return %arg0, %arg1 : i32, i32
  }
  func.func @transform_1(%arg0: i32, %arg1: i32) -> (i32, i32) {
    %c0_i32 = arith.constant 0 : i32
    %c0_i32_0 = arith.constant 0 : i32
    return %arg0, %c0_i32 : i32, i32
  }
  func.func @transform_2(%arg0: i32, %arg1: i32) -> (i32, i32) {
    %c0_i32 = arith.constant 0 : i32
    %c0_i32_0 = arith.constant 0 : i32
    return %arg1, %c0_i32 : i32, i32
  }
  func.func @transform_3(%arg0: i32, %arg1: i32) -> (i32, i32) {
    %c0_i32 = arith.constant 0 : i32
    %c0_i32_0 = arith.constant 0 : i32
    %c0_i32_1 = arith.constant 0 : i32
    return %c0_i32, %c0_i32_0 : i32, i32
  }
  func.func @transform_4(%arg0: i32, %arg1: i32) -> (i32, i32) {
    %c0_i32 = arith.constant 0 : i32
    %c0_i32_0 = arith.constant 0 : i32
    %c0_i32_1 = arith.constant 0 : i32
    return %c0_i32, %c0_i32_0 : i32, i32
  }
  func.func @transform_5(%arg0: i32, %arg1: i32) -> (i32, i32) {
    %c0_i32 = arith.constant 0 : i32
    %c0_i32_0 = arith.constant 0 : i32
    %c0_i32_1 = arith.constant 0 : i32
    return %c0_i32, %c0_i32_0 : i32, i32
  }
  func.func @transform_6(%arg0: i32, %arg1: i32) -> (i32, i32) {
    %c0_i32 = arith.constant 0 : i32
    %c0_i32_0 = arith.constant 0 : i32
    %c0_i32_1 = arith.constant 0 : i32
    return %c0_i32, %c0_i32_0 : i32, i32
  }
  func.func @transform_7(%arg0: i32, %arg1: i32) -> (i32, i32) {
    %c0_i32 = arith.constant 0 : i32
    %c0_i32_0 = arith.constant 0 : i32
    %c0_i32_1 = arith.constant 0 : i32
    return %c0_i32, %c0_i32_0 : i32, i32
  }
  func.func @transform_8(%arg0: i32, %arg1: i32) -> (i32, i32) {
    %c0_i32 = arith.constant 0 : i32
    %c0_i32_0 = arith.constant 0 : i32
    %c0_i32_1 = arith.constant 0 : i32
    return %c0_i32, %c0_i32_0 : i32, i32
  }
  func.func @transform_9(%arg0: i32, %arg1: i32) -> (i32, i32) {
    %c0_i32 = arith.constant 0 : i32
    %c0_i32_0 = arith.constant 0 : i32
    return %arg0, %c0_i32 : i32, i32
  }
  func.func @transform_10(%arg0: i32, %arg1: i32) -> (i32, i32) {
    %c0_i32 = arith.constant 0 : i32
    %c0_i32_0 = arith.constant 0 : i32
    return %arg0, %c0_i32 : i32, i32
  }
  func.func @transform_11(%arg0: i32, %arg1: i32) -> (i32, i32) {
    %c0_i32 = arith.constant 0 : i32
    %c0_i32_0 = arith.constant 0 : i32
    return %arg0, %c0_i32 : i32, i32
  }
}

</mosaic_0001>

<bundles_post_ra>
// kernel: tpu_custom_call.1
= control target key start
LH: loop header
LB: loop body
LE: loop exit
PB: predicated region body
PF: predicated region fallthrough
CT: control target
= control target key end

     0   :  { %17 = vsyncpa [#allocation4], 0  ;;  %s795_s0 = inlined_call_operand.hbm [shape: bf16[24,128], index: 0, kind: input, shape index: {}]   ;;  %s796_s1 = inlined_call_operand.hbm [shape: f32[24,128], index: 1, kind: input, shape index: {}]   ;;  %s797_s2 = inlined_call_operand.hbm [shape: f32[128,128], index: 2, kind: input, shape index: {}]   ;;  %s798_s3 = inlined_call_operand.vmem [shape: f32[1,128], index: 3, kind: input, shape index: {}]   ;;  %s799_s4 = inlined_call_operand.hbm [shape: f32[128,128], index: 4, kind: input, shape index: {}]   ;;  %s800_s5 = inlined_call_operand.vmem [shape: f32[1,128], index: 5, kind: input, shape index: {}]   ;;  %s801_s6 = inlined_call_operand.hbm [shape: f32[128,128], index: 6, kind: input, shape index: {}]   ;;  %s802_s7 = inlined_call_operand.hbm [shape: f32[128,128], index: 7, kind: input, shape index: {}]   ;;  %s803_s8 = inlined_call_operand.vmem [shape: f32[1,128], index: 8, kind: input, shape index: {}]   ;;  %s804_s9 = inlined_call_operand.hbm [shape: f32[24,128], index: 9, kind: output, shape index: {0}]   ;;  %s805_s10 = inlined_call_operand.hbm [shape: f32[24,128], index: 10, kind: output, shape index: {1}]   ;;  %s806_s11 = inlined_call_operand.hbm [shape: f32[24,128], index: 11, kind: output, shape index: {2}]  }
   0x1   :  { %18 = vsyncpa [#allocation7], 0 }
   0x2   :  { %19 = vsyncpa [#allocation10], 0 }
   0x3   :  { %20 = vsyncpa [#allocation13], 0 }
   0x4   :  { %21 = vsyncpa [#allocation5], 0  ;;  %s40_s19 = sshll.u32 %s796_s1, 4  ;;  %s41_s19 = int_to_ptr.hbm [resolvable:$true] %s40_s19 }
   0x5   :  { %22 = vsyncpa [#allocation16], 0  ;;  %s662_s20 = smov [#allocation6]   ;;  %s68_s24 = sshll.u32 %s799_s4, 4  ;;  %s69_s24 = int_to_ptr.hbm [resolvable:$true] %s68_s24 }
   0x6   :  { %s42_s21 = sshll.u32 %s662_s20, 4  ;;  %s663_s25 = smov 128   ;;  %s43_s21 = int_to_ptr.vmem [resolvable:$true] %s42_s21 }
   0x7   :  { %s664_s26 = smov 8   ;;  %s665_s27 = smov [#allocation9]  }
   0x8   :  { %48 = dma.hbm_to_vmem [thread:$0]  %s41_s19, 384, %s43_s21, [#allocation7], %s663_s25, %s663_s25, %s664_s26  }
   0x9   :  { %s70_s28 = sshll.u32 %s665_s27, 4  ;;  %s27_s30 = sshll.u32 %s795_s0, 4  ;;  %s71_s28 = int_to_ptr.vmem [resolvable:$true] %s70_s28  ;;  %s28_s30 = int_to_ptr.hbm [resolvable:$true] %s27_s30 }
   0xa   :  { %76 = dma.hbm_to_vmem [thread:$0]  %s69_s24, 2048, %s71_s28, [#allocation10], %s663_s25, %s663_s25, %s664_s26  }
   0xb   :  { %s666_s4 = smov [#allocation3]   ;;  %s53_s15 = sshll.u32 %s797_s2, 4  ;;  %s54_s15 = int_to_ptr.hbm [resolvable:$true] %s53_s15 }
   0xc   :  { %s29_s12 = sshll.u32 %s666_s4, 4  ;;  %s667_s16 = smov 64   ;;  %s30_s12 = int_to_ptr.vmem [resolvable:$true] %s29_s12 }
   0xd   :  { %s668_s17 = smov 4   ;;  %s669_s18 = smov [#allocation8]  }
   0xe   :  { %35 = dma.hbm_to_vmem [thread:$0]  %s28_s30, 192, %s30_s12, [#allocation4], %s667_s16, %s667_s16, %s668_s17  }
   0xf   :  { %s55_s19 = sshll.u32 %s669_s18, 4  ;;  %s83_s21 = sshll.u32 %s801_s6, 4  ;;  %s56_s19 = int_to_ptr.vmem [resolvable:$true] %s55_s19  ;;  %s84_s21 = int_to_ptr.hbm [resolvable:$true] %s83_s21 }
  0x10   :  { %61 = dma.hbm_to_vmem [thread:$0]  %s54_s15, 2048, %s56_s19, [#allocation7], %s663_s25, %s663_s25, %s664_s26  }
  0x11   :  { %s96_s2 = sshll.u32 %s802_s7, 4  ;;  %s670_s24 = smov [#allocation11]   ;;  %s97_s2 = int_to_ptr.hbm [resolvable:$true] %s96_s2 }
  0x12   :  { %s85_s27 = sshll.u32 %s670_s24, 4  ;;  %s671_s28 = smov [#allocation12]   ;;  %s86_s27 = int_to_ptr.vmem [resolvable:$true] %s85_s27 }
  0x13   :  { %91 = dma.hbm_to_vmem [thread:$0]  %s84_s21, 2048, %s86_s27, [#allocation10], %s663_s25, %s663_s25, %s664_s26  }
  0x14   :  { %s98_s6 = sshll.u32 %s671_s28, 4  ;;  %s99_s6 = int_to_ptr.vmem [resolvable:$true] %s98_s6 }
  0x15   :  { %104 = dma.hbm_to_vmem [thread:$0]  %s97_s2, 2048, %s99_s6, [#allocation13], %s663_s25, %s663_s25, %s664_s26  }
  0x16   :  { %650 = dma.done.wait [#allocation4], 192  }
  0x17   :  { %651 = vsyncadd [#allocation4], 4294967104 }
  0x18   :  { %652 = dma.done.wait [#allocation7], 2432  }
  0x19   :  { %653 = vsyncadd [#allocation7], 4294964864 }
  0x1a   :  { %654 = dma.done.wait [#allocation10], 4096  }
  0x1b   :  { %655 = vsyncadd [#allocation10], 4294963200 }
  0x1c   :  { %656 = dma.done.wait [#allocation13], 2048  }
  0x1d   :  { %657 = vsyncadd [#allocation13], 4294965248  ;;  %v162_v0 = vld [vmem:[#allocation8 + $0x78] sm:$0xff]  ;;  %v161_v2 = vld [vmem:[#allocation8 + $0x70] sm:$0xff]  ;;  %s376_s13 = sshll.u32 %s805_s10, 4  ;;  %s363_s16 = sshll.u32 %s804_s9, 4  ;;  %s377_s13 = int_to_ptr.hbm [resolvable:$true] %s376_s13  ;;  %s364_s16 = int_to_ptr.hbm [resolvable:$true] %s363_s16 }
  0x1e   :  { %v226_v1 = vld [vmem:[#allocation9 + $0x78] sm:$0xff]  ;;  %163 = vmatpush.msra.mxu0 %v162_v0  ;;  %v225_v3 = vld [vmem:[#allocation9 + $0x70] sm:$0xff]  ;;  %v160_v4 = vld [vmem:[#allocation8 + $0x68] sm:$0xff]  ;;  %s673_s17 = smov [#allocation14]   ;;  %s674_s9 = smov [#allocation17]  }
  0x1f   :  { %231 = vmatpush.msra.mxu1 %v226_v1  ;;  %v224_v5 = vld [vmem:[#allocation9 + $0x68] sm:$0xff]  ;;  %v159_v6 = vld [vmem:[#allocation8 + $0x60] sm:$0xff]  ;;  %v158_v8 = vld [vmem:[#allocation8 + $0x58] sm:$0xff]  ;;  %s361_s18 = sshll.u32 %s673_s17, 4  ;;  %s387_s0 = sshll.u32 %s674_s9, 4  ;;  %s362_s18 = int_to_ptr.vmem [resolvable:$true] %s361_s18  ;;  %s388_s0 = int_to_ptr.vmem [resolvable:$true] %s387_s0 }
  0x20   :  { %164 = vmatpush.msra.mxu0 %v161_v2  ;;  %v223_v7 = vld [vmem:[#allocation9 + $0x60] sm:$0xff]  ;;  %v222_v9 = vld [vmem:[#allocation9 + $0x58] sm:$0xff]  ;;  %v157_v10 = vld [vmem:[#allocation8 + $0x50] sm:$0xff]  ;;  %s389_s22 = sshll.u32 %s806_s11, 4  ;;  %s390_s22 = int_to_ptr.hbm [resolvable:$true] %s389_s22 }
  0x21   :  { %232 = vmatpush.msra.mxu1 %v225_v3  ;;  %v221_v11 = vld [vmem:[#allocation9 + $0x50] sm:$0xff]  ;;  %v156_v12 = vld [vmem:[#allocation8 + $0x48] sm:$0xff]  ;;  %v155_v14 = vld [vmem:[#allocation8 + $0x40] sm:$0xff] }
  0x22   :  { %165 = vmatpush.msra.mxu0 %v160_v4  ;;  %v220_v13 = vld [vmem:[#allocation9 + $0x48] sm:$0xff]  ;;  %v219_v15 = vld [vmem:[#allocation9 + $0x40] sm:$0xff]  ;;  %v154_v16 = vld [vmem:[#allocation8 + $0x38] sm:$0xff] }
  0x23   :  { %233 = vmatpush.msra.mxu1 %v224_v5  ;;  %v218_v17 = vld [vmem:[#allocation9 + $0x38] sm:$0xff]  ;;  %v153_v18 = vld [vmem:[#allocation8 + $0x30] sm:$0xff]  ;;  %v152_v24 = vld [vmem:[#allocation8 + $0x28] sm:$0xff] }
  0x24   :  { %166 = vmatpush.msra.mxu0 %v159_v6  ;;  %v217_v19 = vld [vmem:[#allocation9 + $0x30] sm:$0xff]  ;;  %v288_v20 = vld [vmem:[#allocation12 + $0x78] sm:$0xff]  ;;  %v216_v25 = vld [vmem:[#allocation9 + $0x28] sm:$0xff] }
  0x25   :  { %234 = vmatpush.msra.mxu1 %v223_v7  ;;  %v272_v21 = vld [vmem:[#allocation11 + $0x78] sm:$0xff]  ;;  %v287_v22 = vld [vmem:[#allocation12 + $0x70] sm:$0xff]  ;;  %289 = vmatpush.msra.mxu2 %v288_v20  ;;  %v286_v26 = vld [vmem:[#allocation12 + $0x68] sm:$0xff] }
  0x26   :  { %167 = vmatpush.msra.mxu0 %v158_v8  ;;  %v271_v23 = vld [vmem:[#allocation11 + $0x70] sm:$0xff]  ;;  %315 = vmatpush.msra.mxu3 %v272_v21  ;;  %v270_v27 = vld [vmem:[#allocation11 + $0x68] sm:$0xff]  ;;  %v151_v28 = vld [vmem:[#allocation8 + $0x20] sm:$0xff] }
  0x27   :  { %235 = vmatpush.msra.mxu1 %v222_v9  ;;  %v215_v29 = vld [vmem:[#allocation9 + $0x20] sm:$0xff]  ;;  %290 = vmatpush.msra.mxu2 %v287_v22  ;;  %v150_v32 = vld [vmem:[#allocation8 + $0x18] sm:$0xff]  ;;  %v149_v36 = vld [vmem:[#allocation8 + $0x10] sm:$0xff] }
  0x28   :  { %168 = vmatpush.msra.mxu0 %v157_v10  ;;  %316 = vmatpush.msra.mxu3 %v271_v23  ;;  %v285_v30 = vld [vmem:[#allocation12 + $0x60] sm:$0xff]  ;;  %v214_v33 = vld [vmem:[#allocation9 + $0x18] sm:$0xff]  ;;  %v213_v37 = vld [vmem:[#allocation9 + $0x10] sm:$0xff] }
  0x29   :  { %236 = vmatpush.msra.mxu1 %v221_v11  ;;  %v269_v31 = vld [vmem:[#allocation11 + $0x60] sm:$0xff]  ;;  %291 = vmatpush.msra.mxu2 %v286_v26  ;;  %v284_v34 = vld [vmem:[#allocation12 + $0x58] sm:$0xff]  ;;  %v283_v39 = vld [vmem:[#allocation12 + $0x50] sm:$0xff] }
  0x2a   :  { %169 = vmatpush.msra.mxu0 %v156_v12  ;;  %317 = vmatpush.msra.mxu3 %v270_v27  ;;  %v268_v35 = vld [vmem:[#allocation11 + $0x58] sm:$0xff]  ;;  %v267_v40 = vld [vmem:[#allocation11 + $0x50] sm:$0xff]  ;;  %v148_v41 = vld [vmem:[#allocation8 + $0x8] sm:$0xff] }
  0x2b   :  { %237 = vmatpush.msra.mxu1 %v220_v13  ;;  %292 = vmatpush.msra.mxu2 %v285_v30  ;;  %v415_v38 = vld [vmem:[#allocation3] sm:$0xff]   ;;  %v212_v42 = vld [vmem:[#allocation9 + $0x8] sm:$0xff]  ;;  %v279_v53 = vld [vmem:[#allocation12 + $0x30] sm:$0xff] }
  0x2c   :  { %170 = vmatpush.msra.mxu0 %v155_v14  ;;  %318 = vmatpush.msra.mxu3 %v269_v31  ;;  %v282_v43 = vld [vmem:[#allocation12 + $0x48] sm:$0xff]  ;;  %v147_v45 = vld [vmem:[#allocation8] sm:$0xff]  ;;  %v416_v47 = vunpack.c.l.bf16 %v415_v38  ;;  %v280_v51 = vld [vmem:[#allocation12 + $0x38] sm:$0xff]  ;;  %v417_v55 = vunpack.c.h.bf16 %v415_v38 }
  0x2d   :  { %238 = vmatpush.msra.mxu1 %v219_v15  ;;  %293 = vmatpush.msra.mxu2 %v284_v34  ;;  %v266_v44 = vld [vmem:[#allocation11 + $0x48] sm:$0xff]  ;;  %v211_v46 = vld [vmem:[#allocation9] sm:$0xff]  ;;  %v264_v52 = vld [vmem:[#allocation11 + $0x38] sm:$0xff] }
  0x2e   :  { %171 = vmatpush.msra.mxu0 %v154_v16  ;;  %319 = vmatpush.msra.mxu3 %v268_v35  ;;  %v208_v48 = vld [vmem:[#allocation6] sm:$0xff]  ;;  %v281_v49 = vld [vmem:[#allocation12 + $0x40] sm:$0xff]  ;;  %v263_v54 = vld [vmem:[#allocation11 + $0x30] sm:$0xff] }
  0x2f   :  { %239 = vmatpush.msra.mxu1 %v218_v17  ;;  %294 = vmatpush.msra.mxu2 %v283_v39  ;;  %v265_v50 = vld [vmem:[#allocation11 + $0x40] sm:$0xff]  ;;  %v278_v56 = vld [vmem:[#allocation12 + $0x28] sm:$0xff]  ;;  %v209_v58 = vld [vmem:[#allocation6 + $0x8] sm:$0xff] }
  0x30   :  { %172 = vmatpush.msra.mxu0 %v153_v18  ;;  %320 = vmatpush.msra.mxu3 %v267_v40  ;;  %v262_v57 = vld [vmem:[#allocation11 + $0x28] sm:$0xff]  ;;  %v277_v59 = vld [vmem:[#allocation12 + $0x20] sm:$0xff]  ;;  %v276_v61 = vld [vmem:[#allocation12 + $0x18] sm:$0xff] }
  0x31   :  { %240 = vmatpush.msra.mxu1 %v217_v19  ;;  %295 = vmatpush.msra.mxu2 %v282_v43  ;;  %v261_v60 = vld [vmem:[#allocation11 + $0x20] sm:$0xff]  ;;  %v260_v62 = vld [vmem:[#allocation11 + $0x18] sm:$0xff]  ;;  %v275_v0 = vld [vmem:[#allocation12 + $0x10] sm:$0xff] }
  0x32   :  { %173 = vmatpush.msra.mxu0 %v152_v24  ;;  %321 = vmatpush.msra.mxu3 %v266_v44  ;;  %v140_v63 = vld [vmem:[#allocation3 + $0x8] sm:$0xf]  ;;  %v259_v1 = vld [vmem:[#allocation11 + $0x10] sm:$0xff]  ;;  %v210_v3 = vld [vmem:[#allocation6 + $0x10] sm:$0xff] }
  0x33   :  { %241 = vmatpush.msra.mxu1 %v216_v25  ;;  %296 = vmatpush.msra.mxu2 %v281_v49  ;;  %v143_v2 = vunpack.c.l.bf16 %v140_v63  ;;  %v274_v4 = vld [vmem:[#allocation12 + $0x8] sm:$0xff]  ;;  %v273_v6 = vld [vmem:[#allocation12] sm:$0xff]  ;;  %v431_v8 = vld [vmem:[%s798_s3] ss:$0 sm:$0xff]  ;;  %s672_s3 = smov [#allocation15]  }
  0x34   :  { %174 = vmatpush.msra.mxu0 %v151_v28  ;;  %322 = vmatpush.msra.mxu3 %v265_v50  ;;  %v258_v5 = vld [vmem:[#allocation11 + $0x8] sm:$0xff]  ;;  %v257_v7 = vld [vmem:[#allocation11] sm:$0xff]  ;;  %v432_v9 = vld [vmem:[%s800_s5] ss:$0 sm:$0xff]  ;;  %s374_s5 = sshll.u32 %s672_s3, 4  ;;  %s375_s5 = int_to_ptr.vmem [resolvable:$true] %s374_s5 }
  0x35   :  { %242 = vmatpush.msra.mxu1 %v215_v29  ;;  %297 = vmatpush.msra.mxu2 %v280_v51  ;;  %v433_v22 = vld [vmem:[%s803_s8] ss:$0 sm:$0xff] }
  0x36   :  { %175 = vmatpush.msra.mxu0 %v150_v32  ;;  %323 = vmatpush.msra.mxu3 %v264_v52 }
  0x37   :  { %243 = vmatpush.msra.mxu1 %v214_v33  ;;  %298 = vmatpush.msra.mxu2 %v279_v53 }
  0x38   :  { %176 = vmatpush.msra.mxu0 %v149_v36  ;;  %324 = vmatpush.msra.mxu3 %v263_v54 }
  0x39   :  { %244 = vmatpush.msra.mxu1 %v213_v37  ;;  %299 = vmatpush.msra.mxu2 %v278_v56 }
  0x3a   :  { %177 = vmatpush.msra.mxu0 %v148_v41  ;;  %325 = vmatpush.msra.mxu3 %v262_v57 }
  0x3b   :  { %245 = vmatpush.msra.mxu1 %v212_v42  ;;  %300 = vmatpush.msra.mxu2 %v277_v59 }
  0x3c   :  { %178 = vmatpush.msra.mxu0 %v147_v45  ;;  %326 = vmatpush.msra.mxu3 %v261_v60 }
  0x3d   :  { %246 = vmatpush.msra.mxu1 %v211_v46  ;;  %179 = vmatmul.f32.vlgmr.msra.gmra.mxu0 %v416_v47 }
  0x3e   :  { %247 = vmatmul.f32.vlgmr.msra.gmra.mxu1 %v208_v48  ;;  %301 = vmatpush.msra.mxu2 %v276_v61 }
  0x3f   :  { %327 = vmatpush.msra.mxu3 %v260_v62 }
  0x40   :  { %302 = vmatpush.msra.mxu2 %v275_v0 }
  0x41   :  { %328 = vmatpush.msra.mxu3 %v259_v1 }
  0x42   :  { %303 = vmatpush.msra.mxu2 %v274_v4 }
  0x43   :  { %329 = vmatpush.msra.mxu3 %v258_v5 }
  0x44   :  { %304 = vmatpush.msra.mxu2 %v273_v6 }
  0x45   :  { %182 = vmatmul.f32.gmra.mxu0 %v417_v55  ;;  %330 = vmatpush.msra.mxu3 %v257_v7 }
  0x46   :  { %250 = vmatmul.f32.gmra.mxu1 %v209_v58 }
  0x4d   :  { %185 = vmatmul.f32.gmra.mxu0 %v143_v2 }
  0x4e   :  { %253 = vmatmul.f32.gmra.mxu1 %v210_v3 }
  0xba   :  { %v180_v10 = vpop.f32.mrf.mxu0 }
  0xbb   :  { %v248_v11 = vpop.f32.mrf.mxu1  ;;  %v205_v12 = vadd.f32 %v431_v8, %v180_v10 }
  0xbc   :  { %v249_v13 = vadd.f32 %v432_v9, %v248_v11 }
  0xbd   :  { %348 = vst [vmem:[#allocation14] sm:$0xff] %v205_v12  ;;  %331 = vmatmul.f32.vlgmr.msra.gmra.mxu3 %v205_v12 }
  0xbe   :  { %305 = vmatmul.f32.vlgmr.msra.gmra.mxu2 %v249_v13  ;;  %351 = vst [vmem:[#allocation15] sm:$0xff] %v249_v13 }
  0xc2   :  { %v183_v14 = vpop.f32.mrf.mxu0 }
  0xc3   :  { %v251_v15 = vpop.f32.mrf.mxu1  ;;  %v206_v16 = vadd.f32 %v431_v8, %v183_v14 }
  0xc4   :  { %v252_v17 = vadd.f32 %v432_v9, %v251_v15 }
  0xc5   :  { %349 = vst [vmem:[#allocation14 + $0x8] sm:$0xff] %v206_v16  ;;  %334 = vmatmul.f32.gmra.mxu3 %v206_v16 }
  0xc6   :  { %308 = vmatmul.f32.gmra.mxu2 %v252_v17  ;;  %352 = vst [vmem:[#allocation15 + $0x8] sm:$0xff] %v252_v17 }
  0xca   :  { %v186_v18 = vpop.f32.mrf.mxu0 }
  0xcb   :  { %v254_v19 = vpop.f32.mrf.mxu1  ;;  %v207_v20 = vadd.f32 %v431_v8, %v186_v18 }
  0xcc   :  { %v255_v21 = vadd.f32 %v432_v9, %v254_v19 }
  0xcd   :  { %350 = vst [vmem:[#allocation14 + $0x10] sm:$0xff] %v207_v20  ;;  %337 = vmatmul.f32.gmra.mxu3 %v207_v20 }
  0xce   :  { %311 = vmatmul.f32.gmra.mxu2 %v255_v21  ;;  %353 = vst [vmem:[#allocation15 + $0x10] sm:$0xff] %v255_v21  ;;  %369 = dma.vmem_to_hbm [thread:$0]  %s362_s18, 384, %s364_s16, [#allocation5], %s663_s25, %s663_s25, %s664_s26  }
  0xcf   :  { %382 = dma.vmem_to_hbm [thread:$0]  %s375_s5, 384, %s377_s13, [#allocation16], %s663_s25, %s663_s25, %s664_s26  }
 0x140   :  { %v332_v24 = vpop.f32.mrf.mxu3 }
 0x141   :  { %v306_v23 = vpop.f32.mrf.mxu2 }
 0x142   :  { %v333_v25 = vadd.f32 %v332_v24, %v306_v23 }
 0x144   :  { %v345_v26 = vadd.f32 %v433_v22, %v333_v25 }
 0x146   :  { %354 = vst [vmem:[#allocation17] sm:$0xff] %v345_v26 }
 0x148   :  { %v335_v28 = vpop.f32.mrf.mxu3 }
 0x149   :  { %v309_v27 = vpop.f32.mrf.mxu2 }
 0x14a   :  { %v336_v29 = vadd.f32 %v335_v28, %v309_v27 }
 0x14c   :  { %v346_v30 = vadd.f32 %v433_v22, %v336_v29 }
 0x14e   :  { %355 = vst [vmem:[#allocation17 + $0x8] sm:$0xff] %v346_v30 }
 0x150   :  { %v338_v32 = vpop.f32.mrf.mxu3 }
 0x151   :  { %v312_v31 = vpop.f32.mrf.mxu2 }
 0x152   :  { %v339_v33 = vadd.f32 %v338_v32, %v312_v31 }
 0x154   :  { %v347_v34 = vadd.f32 %v433_v22, %v339_v33 }
 0x156   :  { %356 = vst [vmem:[#allocation17 + $0x10] sm:$0xff] %v347_v34 }
 0x157   :  { %395 = dma.vmem_to_hbm [thread:$0]  %s388_s0, 384, %s390_s22, [#allocation16], %s663_s25, %s663_s25, %s664_s26  }
 0x158   :  { %658 = dma.done.wait [#allocation5], 384  }
 0x159   :  { %659 = vsyncadd [#allocation5], 4294966912 }
 0x15a   :  { %660 = dma.done.wait [#allocation16], 768  }
 0x15b   :  { %661 = vsyncadd [#allocation16], 4294966528 }
 0x15c   :  { %408 = vsyncpa [#allocation4], 1 }
 0x15d   :  { %409 = vsyncpa [#allocation7], 1 }
 0x15e   :  { %410 = vsyncpa [#allocation10], 1 }
 0x15f   :  { %411 = vsyncpa [#allocation13], 1 }
 0x160   :  { %412 = vsyncpa [#allocation5], 1 }
 0x161   :  { %413 = vsyncpa [#allocation16], 1 }

</bundles_post_ra>
